<compile_context>
chip_gen: v5e
topology: v5e:2x2
jax: 0.10.0
libtpu: 0.0.40
codegen_flags: <defaults>
</compile_context>

<pallas_src>
import math
import functools

import jax
import jax.numpy as jnp
from jax.experimental import pallas as pl
from jax.experimental.pallas import tpu as pltpu


# ---------------------------------------------------------------------------
# Kernel body
# ---------------------------------------------------------------------------

def _attn_kernel(*refs, bt, T, E, fuse, has_mask):
    """refs = (x, [mask], <qkv weights>, wo, bo, out)."""
    o_ref = refs[-1]
    it = iter(refs[:-1])
    x_ref = next(it)
    mask_ref = next(it) if has_mask else None
    if fuse:
        wqkv_ref, bqkv_ref = next(it), next(it)
    else:
        wq_ref, bq_ref = next(it), next(it)
        wk_ref, bk_ref = next(it), next(it)
        wv_ref, bv_ref = next(it), next(it)
    wo_ref, bo_ref = next(it), next(it)

    rows = bt * T
    x = x_ref[...]                            # (bt, T, E) bf16 (cast on host)

    def proj(xb, w_ref, b_ref):
        # (bt*T, Ein) @ (Ein, F) on the MXU, f32 accumulation.  T % 8 == 0 is
        # enforced in the wrapper so the reshapes stay tile-aligned metadata.
        ein = xb.shape[-1]
        f = w_ref.shape[-1]
        y = jnp.dot(xb.reshape(rows, ein), w_ref[...],
                    preferred_element_type=jnp.float32)
        return y.reshape(bt, T, f) + b_ref[0]

    if fuse:
        # One (bt*T, E) @ (E, 3E) matmul; slices are lane-aligned because the
        # wrapper only selects this path when E % 128 == 0.
        qkv = proj(x, wqkv_ref, bqkv_ref)     # 1/sqrt(E) folded into Q slice
        q = qkv[..., 0 * E:1 * E]
        k = qkv[..., 1 * E:2 * E]
        v = qkv[..., 2 * E:3 * E]
    else:
        q = proj(x, wq_ref, bq_ref)           # 1/sqrt(E) folded into wq/bq
        k = proj(x, wk_ref, bk_ref)
        v = proj(x, wv_ref, bv_ref)

    # Attention scores (bt, T, T): bf16 MXU inputs, f32 accumulation.
    scores = jnp.einsum("bqd,bkd->bqk",
                        q.astype(jnp.bfloat16), k.astype(jnp.bfloat16),
                        preferred_element_type=jnp.float32)
    if has_mask:
        # Additive bias (0 / -1e9) shipped as bf16, widened on the VPU.
        scores = scores + mask_ref[...].astype(jnp.float32)[None, :, :]

    # Numerically stable softmax with DEFERRED normalization: only max/exp/sum
    # touch the (bt,T,T) tensor; 1/denom is applied to the (bt,T,E) context.
    m = jnp.max(scores, axis=-1, keepdims=True)
    e = jnp.exp(scores - m)
    denom = jnp.sum(e, axis=-1, keepdims=True)

    # Dropout(p=0.1) is identity in eval mode.

    ctx = jnp.einsum("bqk,bkd->bqd",
                     e.astype(jnp.bfloat16), v.astype(jnp.bfloat16),
                     preferred_element_type=jnp.float32)
    ctx = ctx * pl.reciprocal(denom, approx=True)      # EUP vrcp

    out = proj(ctx.astype(jnp.bfloat16), wo_ref, bo_ref)
    o_ref[...] = out.astype(o_ref.dtype)


# ---------------------------------------------------------------------------
# Host-side helpers
# ---------------------------------------------------------------------------

def _tpu_hw():
    """(per-core VMEM bytes, has-2-TensorCores?) with conservative fallbacks."""
    vmem_cap = None
    try:
        info = pltpu.get_tpu_info()
        vmem_cap = int(getattr(info, "vmem_capacity_bytes", 0)) or None
    except Exception:
        vmem_cap = None
    if vmem_cap is None:
        vmem_cap = 64 << 20          # smallest per-TC VMEM of any supported gen (v7x)
    kind = ""
    try:
        kind = jax.devices()[0].device_kind.lower()
    except Exception:
        pass
    multi_tc = "v7" in kind          # v7x: 2 TensorCores per chip
    return vmem_cap, multi_tc


def _const_spec(shape):
    """BlockSpec for a grid-invariant operand: whole array, single-buffered."""
    index_map = lambda b: (0,) * len(shape)
    try:
        return pl.BlockSpec(shape, index_map, pipeline_mode=pl.Buffered(1))
    except TypeError:                # older jax without pipeline_mode kwarg
        return pl.BlockSpec(shape, index_map)


def _vmem_bytes_estimate(bt, T, E, has_mask):
    """Rough per-step VMEM footprint (I/O buffers + weights + intermediates)."""
    bf16, f32 = 2, 4
    rows = bt * T
    io = 2 * rows * E * (bf16 + f32)                   # x (bf16) + out (f32), 2x buffered
    weights = 4 * E * E * bf16 + 4 * E * f32           # single-buffered
    mask_b = T * T * bf16 if has_mask else 0
    interm = (rows * 3 * E * (f32 + bf16)              # q/k/v f32 + bf16 copies
              + rows * T * (2 * f32 + bf16)            # scores, exp (f32) + bf16 copy
              + rows * E * (2 * f32 + bf16))           # ctx f32, out f32, ctx bf16
    return io + weights + mask_b + interm


def _vmem_limit_bytes(est, vmem_cap):
    # ~2x the static estimate plus slack, capped at ~7/8 of the chip's real
    # per-core VMEM (v7x 64 MiB -> <=56 MiB) to leave compiler-scratch headroom.
    hi = min(vmem_cap * 7 // 8, vmem_cap - (8 << 20))
    want = 2 * est + (8 << 20)
    return int(max(min(want, hi), min(32 << 20, hi)))


def _pick_block_batch(B, T, E, has_mask, vmem_cap, multi_tc):
    """Batch elements per grid step: VMEM-aware, generation-aware."""
    budget = int(vmem_cap * 0.7)
    target_rows = 512 if multi_tc else 2048
    divisors = [d for d in range(1, B + 1) if B % d == 0]
    fitting = [d for d in divisors
               if d * T <= target_rows
               and _vmem_bytes_estimate(d, T, E, has_mask) <= budget]
    bt = max(fitting) if fitting else 1
    if multi_tc and B > 1:
        # Prefer an even number of grid steps so both TensorCores stay busy.
        even = [d for d in divisors if d <= bt and (B // d) % 2 == 0]
        if even:
            bt = max(even)
        else:
            smaller = [d for d in divisors if d < B and d <= bt]
            if smaller:
                bt = max(smaller)
    return bt


# ---------------------------------------------------------------------------
# Wrapper
# ---------------------------------------------------------------------------

def single_head_self_attention(x, params, mask=None):
    """x: (B, T, E) float32. params: PyTorch-convention nn.Linear params."""
    B, T, E = x.shape
    if T % 8 != 0:
        raise ValueError("T must be a multiple of 8 (TPU sublane tile); pad the "
                         "sequence (and mask) before calling the kernel.")
    scale = float(E) ** -0.5
    fuse = (E % 128 == 0)            # fused QKV only when slices are lane-aligned
    has_mask = mask is not None

    vmem_cap, multi_tc = _tpu_hw()
    bt = _pick_block_batch(B, T, E, has_mask, vmem_cap, multi_tc)
    grid = (B // bt,)

    # --- host-side operand prep -------------------------------------------
    x_bf = x.astype(jnp.bfloat16)                       # halve the x HBM stream
    if fuse:
        wqkv = jnp.concatenate(
            [params["wq"].T * scale, params["wk"].T, params["wv"].T],
            axis=1).astype(jnp.bfloat16)                               # (E, 3E)
        bqkv = jnp.concatenate(
            [params["bq"] * scale, params["bk"], params["bv"]]
        ).astype(jnp.float32).reshape(1, 3 * E)                        # (1, 3E)
        w_args = [wqkv, bqkv]
        w_specs = [_const_spec((E, 3 * E)), _const_spec((1, 3 * E))]
    else:
        w_args = [
            (params["wq"].T * scale).astype(jnp.bfloat16),
            (params["bq"] * scale).astype(jnp.float32).reshape(1, E),
            params["wk"].T.astype(jnp.bfloat16),
            params["bk"].astype(jnp.float32).reshape(1, E),
            params["wv"].T.astype(jnp.bfloat16),
            params["bv"].astype(jnp.float32).reshape(1, E),
        ]
        w_specs = [_const_spec((E, E)), _const_spec((1, E))] * 3
    wo_t = params["wo"].T.astype(jnp.bfloat16)                         # (E, E)
    bo = params["bo"].astype(jnp.float32).reshape(1, E)                # (1, E)

    x_spec = pl.BlockSpec((bt, T, E), lambda b: (b, 0, 0))
    o_spec = pl.BlockSpec((bt, T, E), lambda b: (b, 0, 0))

    in_specs = [x_spec]
    args = [x_bf]
    mask_bytes = 0
    if has_mask:
        # Additive mask bias: 0 where attended, -1e9 where masked (bf16).
        # TODO(synk): for a purely causal mask, build it in-kernel with
        # lax.broadcasted_iota instead of streaming it from HBM.
        mask_add = jnp.where(mask == 0, -1e9, 0.0).astype(jnp.bfloat16)
        in_specs.append(_const_spec((T, T)))
        args.append(mask_add)
        mask_bytes = T * T * 2
    in_specs += w_specs + [_const_spec((E, E)), _const_spec((1, E))]
    args += w_args + [wo_t, bo]

    kernel = functools.partial(_attn_kernel, bt=bt, T=T, E=E,
                               fuse=fuse, has_mask=has_mask)

    flops = 2 * B * (4 * T * E * E + 2 * T * T * E)
    bytes_accessed = (B * T * E * (2 + 4)               # x in (bf16) + out (f32)
                      + 4 * E * E * 2 + 4 * E * 4       # weights + biases
                      + mask_bytes)
    cost = pl.CostEstimate(flops=flops, transcendentals=B * T * T,
                           bytes_accessed=bytes_accessed)

    vmem_est = _vmem_bytes_estimate(bt, T, E, has_mask)
    return pl.pallas_call(
        kernel,
        out_shape=jax.ShapeDtypeStruct((B, T, E), x.dtype),
        grid=grid,
        in_specs=in_specs,
        out_specs=o_spec,
        compiler_params=pltpu.CompilerParams(
            dimension_semantics=("parallel",),
            vmem_limit_bytes=_vmem_limit_bytes(vmem_est, vmem_cap),
        ),
        cost_estimate=cost,
    )(*args)


# ---------------------------------------------------------------------------
# Params / reference
# ---------------------------------------------------------------------------

def init_params(key, embed_dim):
    """nn.Linear default init: U[-1/sqrt(fan_in), 1/sqrt(fan_in)]."""
    bound = 1.0 / math.sqrt(embed_dim)
    keys = jax.random.split(key, 8)

    def u(k, shape):
        return jax.random.uniform(k, shape, jnp.float32, -bound, bound)

    return {
        "wq": u(keys[0], (embed_dim, embed_dim)), "bq": u(keys[1], (embed_dim,)),
        "wk": u(keys[2], (embed_dim, embed_dim)), "bk": u(keys[3], (embed_dim,)),
        "wv": u(keys[4], (embed_dim, embed_dim)), "bv": u(keys[5], (embed_dim,)),
        "wo": u(keys[6], (embed_dim, embed_dim)), "bo": u(keys[7], (embed_dim,)),
    }


def reference(x, params, mask=None):
    """Pure-JAX f32 reference of the PyTorch forward (eval mode, no dropout)."""
    E = x.shape[-1]
    scale = float(E) ** -0.5
    q = x @ params["wq"].T + params["bq"]
    k = x @ params["wk"].T + params["bk"]
    v = x @ params["wv"].T + params["bv"]
    s = jnp.einsum("btd,bsd->bts", q, k) * scale
    if mask is not None:
        s = jnp.where(mask[None, :, :] == 0, -1e9, s)
    a = jax.nn.softmax(s, axis=-1)
    ctx = jnp.einsum("bts,bsd->btd", a, v)
    return ctx @ params["wo"].T + params["bo"]


# ---------------------------------------------------------------------------
# Self-test
# ---------------------------------------------------------------------------

if __name__ == "__main__":
    B, T, E = 2, 8, 32
    key = jax.random.PRNGKey(0)
    kx, kp = jax.random.split(key)
    x = jax.random.normal(kx, (B, T, E), jnp.float32)
    params = init_params(kp, E)

    # Unmasked path.
    out = jax.block_until_ready(single_head_self_attention(x, params, mask=None))
    ref = reference(x, params, mask=None)
    assert out.shape == (B, T, E)
    # bf16 MXU inputs with f32 accumulation + approx reciprocal -> loose tolerance.
    assert jnp.allclose(out, ref, atol=5e-2, rtol=5e-2), \
        float(jnp.max(jnp.abs(out - ref)))

    # Masked path (causal mask shared across batch, as in the PyTorch module).
    mask = jnp.tril(jnp.ones((T, T), jnp.int32))
    out_m = jax.block_until_ready(single_head_self_attention(x, params, mask=mask))
    ref_m = reference(x, params, mask=mask)
    assert jnp.allclose(out_m, ref_m, atol=5e-2, rtol=5e-2), \
        float(jnp.max(jnp.abs(out_m - ref_m)))

    print("KERNEL_OK")
</pallas_src>

<mosaic_0001>
module attributes {stable_mosaic.version = 11 : i64} {
  func.func @_attn_kernel(%arg0: i32, %arg1: memref<2x8x32xbf16, #tpu.memory_space<vmem>>, %arg2: memref<32x32xbf16, #tpu.memory_space<vmem>>, %arg3: memref<1x32xf32, #tpu.memory_space<vmem>>, %arg4: memref<32x32xbf16, #tpu.memory_space<vmem>>, %arg5: memref<1x32xf32, #tpu.memory_space<vmem>>, %arg6: memref<32x32xbf16, #tpu.memory_space<vmem>>, %arg7: memref<1x32xf32, #tpu.memory_space<vmem>>, %arg8: memref<32x32xbf16, #tpu.memory_space<vmem>>, %arg9: memref<1x32xf32, #tpu.memory_space<vmem>>, %arg10: memref<2x8x32xf32, #tpu.memory_space<vmem>>) attributes {dimension_semantics = [#tpu.dimension_semantics<parallel>], iteration_bounds = array<i64: 1>, scalar_prefetch = 0 : i64, scratch_operands = 0 : i64, tpu.core_type = #tpu.core_type<tc>, window_params = [{transform_indices = @transform_0, window_bounds = array<i64: 2, 8, 32>}, {pipeline_mode = #tpu.pipeline_mode<synchronous>, transform_indices = @transform_1, window_bounds = array<i64: 32, 32>}, {pipeline_mode = #tpu.pipeline_mode<synchronous>, transform_indices = @transform_2, window_bounds = array<i64: 1, 32>}, {pipeline_mode = #tpu.pipeline_mode<synchronous>, transform_indices = @transform_3, window_bounds = array<i64: 32, 32>}, {pipeline_mode = #tpu.pipeline_mode<synchronous>, transform_indices = @transform_4, window_bounds = array<i64: 1, 32>}, {pipeline_mode = #tpu.pipeline_mode<synchronous>, transform_indices = @transform_5, window_bounds = array<i64: 32, 32>}, {pipeline_mode = #tpu.pipeline_mode<synchronous>, transform_indices = @transform_6, window_bounds = array<i64: 1, 32>}, {pipeline_mode = #tpu.pipeline_mode<synchronous>, transform_indices = @transform_7, window_bounds = array<i64: 32, 32>}, {pipeline_mode = #tpu.pipeline_mode<synchronous>, transform_indices = @transform_8, window_bounds = array<i64: 1, 32>}, {transform_indices = @transform_9, window_bounds = array<i64: 2, 8, 32>}]} {
    %c0 = arith.constant 0 : index
    %c0_0 = arith.constant 0 : index
    %c0_1 = arith.constant 0 : index
    %0 = vector.load %arg1[%c0, %c0_0, %c0_1] : memref<2x8x32xbf16, #tpu.memory_space<vmem>>, vector<2x8x32xbf16>
    %1 = vector.shape_cast %0 : vector<2x8x32xbf16> to vector<16x32xbf16>
    %c0_2 = arith.constant 0 : index
    %c0_3 = arith.constant 0 : index
    %2 = vector.load %arg2[%c0_2, %c0_3] : memref<32x32xbf16, #tpu.memory_space<vmem>>, vector<32x32xbf16>
    %cst = arith.constant dense<0.000000e+00> : vector<16x32xf32>
    %3 = tpu.matmul %1, %2, %cst {dimension_numbers = #tpu.dot_dimension_numbers<[1], [0], [0], [1], [0, 0, 1, 1], [], []>} : vector<16x32xbf16>, vector<32x32xbf16>, vector<16x32xf32> -> vector<16x32xf32>
    %4 = vector.shape_cast %3 : vector<16x32xf32> to vector<2x8x32xf32>
    %c0_4 = arith.constant 0 : index
    %c0_5 = arith.constant 0 : index
    %5 = vector.load %arg3[%c0_4, %c0_5] : memref<1x32xf32, #tpu.memory_space<vmem>>, vector<1x32xf32>
    %6 = vector.shape_cast %5 : vector<1x32xf32> to vector<32xf32>
    %7 = vector.shape_cast %6 : vector<32xf32> to vector<1x1x32xf32>
    %8 = vector.broadcast %7 : vector<1x1x32xf32> to vector<2x8x32xf32>
    %9 = arith.addf %4, %8 : vector<2x8x32xf32>
    %10 = vector.shape_cast %0 : vector<2x8x32xbf16> to vector<16x32xbf16>
    %c0_6 = arith.constant 0 : index
    %c0_7 = arith.constant 0 : index
    %11 = vector.load %arg4[%c0_6, %c0_7] : memref<32x32xbf16, #tpu.memory_space<vmem>>, vector<32x32xbf16>
    %cst_8 = arith.constant dense<0.000000e+00> : vector<16x32xf32>
    %12 = tpu.matmul %10, %11, %cst_8 {dimension_numbers = #tpu.dot_dimension_numbers<[1], [0], [0], [1], [0, 0, 1, 1], [], []>} : vector<16x32xbf16>, vector<32x32xbf16>, vector<16x32xf32> -> vector<16x32xf32>
    %13 = vector.shape_cast %12 : vector<16x32xf32> to vector<2x8x32xf32>
    %c0_9 = arith.constant 0 : index
    %c0_10 = arith.constant 0 : index
    %14 = vector.load %arg5[%c0_9, %c0_10] : memref<1x32xf32, #tpu.memory_space<vmem>>, vector<1x32xf32>
    %15 = vector.shape_cast %14 : vector<1x32xf32> to vector<32xf32>
    %16 = vector.shape_cast %15 : vector<32xf32> to vector<1x1x32xf32>
    %17 = vector.broadcast %16 : vector<1x1x32xf32> to vector<2x8x32xf32>
    %18 = arith.addf %13, %17 : vector<2x8x32xf32>
    %19 = vector.shape_cast %0 : vector<2x8x32xbf16> to vector<16x32xbf16>
    %c0_11 = arith.constant 0 : index
    %c0_12 = arith.constant 0 : index
    %20 = vector.load %arg6[%c0_11, %c0_12] : memref<32x32xbf16, #tpu.memory_space<vmem>>, vector<32x32xbf16>
    %cst_13 = arith.constant dense<0.000000e+00> : vector<16x32xf32>
    %21 = tpu.matmul %19, %20, %cst_13 {dimension_numbers = #tpu.dot_dimension_numbers<[1], [0], [0], [1], [0, 0, 1, 1], [], []>} : vector<16x32xbf16>, vector<32x32xbf16>, vector<16x32xf32> -> vector<16x32xf32>
    %22 = vector.shape_cast %21 : vector<16x32xf32> to vector<2x8x32xf32>
    %c0_14 = arith.constant 0 : index
    %c0_15 = arith.constant 0 : index
    %23 = vector.load %arg7[%c0_14, %c0_15] : memref<1x32xf32, #tpu.memory_space<vmem>>, vector<1x32xf32>
    %24 = vector.shape_cast %23 : vector<1x32xf32> to vector<32xf32>
    %25 = vector.shape_cast %24 : vector<32xf32> to vector<1x1x32xf32>
    %26 = vector.broadcast %25 : vector<1x1x32xf32> to vector<2x8x32xf32>
    %27 = arith.addf %22, %26 : vector<2x8x32xf32>
    %28 = arith.truncf %9 : vector<2x8x32xf32> to vector<2x8x32xbf16>
    %29 = arith.truncf %18 : vector<2x8x32xf32> to vector<2x8x32xbf16>
    "tpu.trace_start"() <{level = 10 : i32, message = "bqd,bkd->bqk"}> : () -> ()
    %cst_16 = arith.constant dense<0.000000e+00> : vector<2x8x8xf32>
    %30 = tpu.matmul %28, %29, %cst_16 {dimension_numbers = #tpu.dot_dimension_numbers<[2], [2], [1], [1], [0, 0, 0, 1, 1, 1], [0], [0]>} : vector<2x8x32xbf16>, vector<2x8x32xbf16>, vector<2x8x8xf32> -> vector<2x8x8xf32>
    "tpu.trace_stop"() : () -> ()
    %cst_17 = arith.constant dense<0xFF800000> : vector<2x8xf32>
    %31 = vector.multi_reduction <maximumf>, %30, %cst_17 [2] : vector<2x8x8xf32> to vector<2x8xf32>
    %32 = vector.shape_cast %31 : vector<2x8xf32> to vector<2x8x1xf32>
    %33 = vector.broadcast %32 : vector<2x8x1xf32> to vector<2x8x8xf32>
    %34 = arith.subf %30, %33 : vector<2x8x8xf32>
    %35 = math.exp %34 : vector<2x8x8xf32>
    %cst_18 = arith.constant dense<0.000000e+00> : vector<2x8xf32>
    %36 = vector.multi_reduction <add>, %35, %cst_18 [2] : vector<2x8x8xf32> to vector<2x8xf32>
    %37 = vector.shape_cast %36 : vector<2x8xf32> to vector<2x8x1xf32>
    %38 = arith.truncf %35 : vector<2x8x8xf32> to vector<2x8x8xbf16>
    %39 = arith.truncf %27 : vector<2x8x32xf32> to vector<2x8x32xbf16>
    "tpu.trace_start"() <{level = 10 : i32, message = "bqk,bkd->bqd"}> : () -> ()
    %cst_19 = arith.constant dense<0.000000e+00> : vector<2x8x32xf32>
    %40 = tpu.matmul %38, %39, %cst_19 {dimension_numbers = #tpu.dot_dimension_numbers<[2], [1], [1], [2], [0, 0, 0, 1, 1, 2], [0], [0]>} : vector<2x8x8xbf16>, vector<2x8x32xbf16>, vector<2x8x32xf32> -> vector<2x8x32xf32>
    "tpu.trace_stop"() : () -> ()
    %41 = tpu.reciprocal %37 {approx = true} : vector<2x8x1xf32> -> vector<2x8x1xf32>
    %42 = vector.broadcast %41 : vector<2x8x1xf32> to vector<2x8x32xf32>
    %43 = arith.mulf %40, %42 : vector<2x8x32xf32>
    %44 = arith.truncf %43 : vector<2x8x32xf32> to vector<2x8x32xbf16>
    %45 = vector.shape_cast %44 : vector<2x8x32xbf16> to vector<16x32xbf16>
    %c0_20 = arith.constant 0 : index
    %c0_21 = arith.constant 0 : index
    %46 = vector.load %arg8[%c0_20, %c0_21] : memref<32x32xbf16, #tpu.memory_space<vmem>>, vector<32x32xbf16>
    %cst_22 = arith.constant dense<0.000000e+00> : vector<16x32xf32>
    %47 = tpu.matmul %45, %46, %cst_22 {dimension_numbers = #tpu.dot_dimension_numbers<[1], [0], [0], [1], [0, 0, 1, 1], [], []>} : vector<16x32xbf16>, vector<32x32xbf16>, vector<16x32xf32> -> vector<16x32xf32>
    %48 = vector.shape_cast %47 : vector<16x32xf32> to vector<2x8x32xf32>
    %c0_23 = arith.constant 0 : index
    %c0_24 = arith.constant 0 : index
    %49 = vector.load %arg9[%c0_23, %c0_24] : memref<1x32xf32, #tpu.memory_space<vmem>>, vector<1x32xf32>
    %50 = vector.shape_cast %49 : vector<1x32xf32> to vector<32xf32>
    %51 = vector.shape_cast %50 : vector<32xf32> to vector<1x1x32xf32>
    %52 = vector.broadcast %51 : vector<1x1x32xf32> to vector<2x8x32xf32>
    %53 = arith.addf %48, %52 : vector<2x8x32xf32>
    %c0_25 = arith.constant 0 : index
    %c0_26 = arith.constant 0 : index
    %c0_27 = arith.constant 0 : index
    %54 = vector.load %arg10[%c0_25, %c0_26, %c0_27] : memref<2x8x32xf32, #tpu.memory_space<vmem>>, vector<2x8x32xf32>
    tpu.vector_store %arg10[%c0_25, %c0_26, %c0_27], %53 {strides = array<i32>} : memref<2x8x32xf32, #tpu.memory_space<vmem>>, vector<2x8x32xf32>,
    return
  }
  func.func @transform_0(%arg0: i32) -> (i32, i32, i32) {
    %c0_i32 = arith.constant 0 : i32
    %c0_i32_0 = arith.constant 0 : i32
    %c0_i32_1 = arith.constant 0 : i32
    return %arg0, %c0_i32, %c0_i32_0 : i32, i32, i32
  }
  func.func @transform_1(%arg0: i32) -> (i32, i32) {
    %c0_i32 = arith.constant 0 : i32
    %c0_i32_0 = arith.constant 0 : i32
    %c0_i32_1 = arith.constant 0 : i32
    return %c0_i32, %c0_i32_0 : i32, i32
  }
  func.func @transform_2(%arg0: i32) -> (i32, i32) {
    %c0_i32 = arith.constant 0 : i32
    %c0_i32_0 = arith.constant 0 : i32
    %c0_i32_1 = arith.constant 0 : i32
    return %c0_i32, %c0_i32_0 : i32, i32
  }
  func.func @transform_3(%arg0: i32) -> (i32, i32) {
    %c0_i32 = arith.constant 0 : i32
    %c0_i32_0 = arith.constant 0 : i32
    %c0_i32_1 = arith.constant 0 : i32
    return %c0_i32, %c0_i32_0 : i32, i32
  }
  func.func @transform_4(%arg0: i32) -> (i32, i32) {
    %c0_i32 = arith.constant 0 : i32
    %c0_i32_0 = arith.constant 0 : i32
    %c0_i32_1 = arith.constant 0 : i32
    return %c0_i32, %c0_i32_0 : i32, i32
  }
  func.func @transform_5(%arg0: i32) -> (i32, i32) {
    %c0_i32 = arith.constant 0 : i32
    %c0_i32_0 = arith.constant 0 : i32
    %c0_i32_1 = arith.constant 0 : i32
    return %c0_i32, %c0_i32_0 : i32, i32
  }
  func.func @transform_6(%arg0: i32) -> (i32, i32) {
    %c0_i32 = arith.constant 0 : i32
    %c0_i32_0 = arith.constant 0 : i32
    %c0_i32_1 = arith.constant 0 : i32
    return %c0_i32, %c0_i32_0 : i32, i32
  }
  func.func @transform_7(%arg0: i32) -> (i32, i32) {
    %c0_i32 = arith.constant 0 : i32
    %c0_i32_0 = arith.constant 0 : i32
    %c0_i32_1 = arith.constant 0 : i32
    return %c0_i32, %c0_i32_0 : i32, i32
  }
  func.func @transform_8(%arg0: i32) -> (i32, i32) {
    %c0_i32 = arith.constant 0 : i32
    %c0_i32_0 = arith.constant 0 : i32
    %c0_i32_1 = arith.constant 0 : i32
    return %c0_i32, %c0_i32_0 : i32, i32
  }
  func.func @transform_9(%arg0: i32) -> (i32, i32, i32) {
    %c0_i32 = arith.constant 0 : i32
    %c0_i32_0 = arith.constant 0 : i32
    %c0_i32_1 = arith.constant 0 : i32
    return %arg0, %c0_i32, %c0_i32_0 : i32, i32, i32
  }
}

</mosaic_0001>

<bundles_post_ra>
// kernel: tpu_custom_call.1
= control target key start
LH: loop header
LB: loop body
LE: loop exit
PB: predicated region body
PF: predicated region fallthrough
CT: control target
= control target key end

     0   :  { %14 = vsyncpa [#allocation3], 0  ;;  %s741_s0 = inlined_call_operand.hbm [shape: bf16[2,8,32], index: 0, kind: input, shape index: {}]   ;;  %s742_s1 = inlined_call_operand.hbm [shape: bf16[32,32], index: 1, kind: input, shape index: {}]   ;;  %s743_s2 = inlined_call_operand.vmem [shape: f32[1,32], index: 2, kind: input, shape index: {}]   ;;  %s744_s3 = inlined_call_operand.hbm [shape: bf16[32,32], index: 3, kind: input, shape index: {}]   ;;  %s745_s4 = inlined_call_operand.vmem [shape: f32[1,32], index: 4, kind: input, shape index: {}]   ;;  %s746_s5 = inlined_call_operand.hbm [shape: bf16[32,32], index: 5, kind: input, shape index: {}]   ;;  %s747_s6 = inlined_call_operand.vmem [shape: f32[1,32], index: 6, kind: input, shape index: {}]   ;;  %s748_s7 = inlined_call_operand.hbm [shape: bf16[32,32], index: 7, kind: input, shape index: {}]   ;;  %s749_s8 = inlined_call_operand.vmem [shape: f32[1,32], index: 8, kind: input, shape index: {}]   ;;  %s750_s9 = inlined_call_operand.hbm [shape: f32[2,8,32], index: 9, kind: output, shape index: {}]  }
   0x1   :  { %15 = vsyncpa [#allocation6], 0 }
   0x2   :  { %16 = vsyncpa [#allocation9], 0 }
   0x3   :  { %17 = vsyncpa [#allocation4], 0  ;;  %s35_s11 = sshll.u32 %s742_s1, 4  ;;  %s635_s12 = smov [#allocation5]   ;;  %s36_s11 = int_to_ptr.hbm [resolvable:$true] %s35_s11 }
   0x4   :  { %s37_s13 = sshll.u32 %s635_s12, 4  ;;  %s65_s16 = sshll.u32 %s746_s5, 4  ;;  %s38_s13 = int_to_ptr.vmem [resolvable:$true] %s37_s13  ;;  %s66_s16 = int_to_ptr.hbm [resolvable:$true] %s65_s16 }
   0x5   :  { %s636_s17 = smov 64   ;;  %s637_s18 = smov 4  }
   0x6   :  { %43 = dma.hbm_to_vmem [thread:$0]  %s36_s11, 256, %s38_s13, [#allocation6], %s636_s17, %s636_s17, %s637_s18  }
   0x7   :  { %s638_s19 = smov [#allocation8]   ;;  %s22_s23 = sshll.u32 %s741_s0, 4  ;;  %s23_s23 = int_to_ptr.hbm [resolvable:$true] %s22_s23 }
   0x8   :  { %s67_s20 = sshll.u32 %s638_s19, 4  ;;  %s50_s25 = sshll.u32 %s744_s3, 4  ;;  %s68_s20 = int_to_ptr.vmem [resolvable:$true] %s67_s20  ;;  %s51_s25 = int_to_ptr.hbm [resolvable:$true] %s50_s25 }
   0x9   :  { %73 = dma.hbm_to_vmem [thread:$0]  %s66_s16, 256, %s68_s20, [#allocation9], %s636_s17, %s636_s17, %s637_s18  }
   0xa   :  { %s639_s26 = smov [#allocation2]   ;;  %s640_s5 = smov [#allocation7]  }
   0xb   :  { %s24_s27 = sshll.u32 %s639_s26, 4  ;;  %s52_s28 = sshll.u32 %s640_s5, 4  ;;  %s25_s27 = int_to_ptr.vmem [resolvable:$true] %s24_s27  ;;  %s53_s28 = int_to_ptr.vmem [resolvable:$true] %s52_s28 }
   0xc   :  { %30 = dma.hbm_to_vmem [thread:$0]  %s23_s23, 128, %s25_s27, [#allocation3], %s636_s17, %s636_s17, %s637_s18  }
   0xd   :  { %s80_s10 = sshll.u32 %s748_s7, 4  ;;  %s641_s0 = smov [#allocation10]   ;;  %s81_s10 = int_to_ptr.hbm [resolvable:$true] %s80_s10 }
   0xe   :  { %58 = dma.hbm_to_vmem [thread:$0]  %s51_s25, 256, %s53_s28, [#allocation6], %s636_s17, %s636_s17, %s637_s18  }
   0xf   :  { %s82_s11 = sshll.u32 %s641_s0, 4  ;;  %s83_s11 = int_to_ptr.vmem [resolvable:$true] %s82_s11 }
  0x10   :  { %88 = dma.hbm_to_vmem [thread:$0]  %s81_s10, 256, %s83_s11, [#allocation9], %s636_s17, %s636_s17, %s637_s18  }
  0x11   :  { %627 = dma.done.wait [#allocation3], 128  }
  0x12   :  { %628 = vsyncadd [#allocation3], 4294967168 }
  0x13   :  { %629 = dma.done.wait [#allocation6], 512  }
  0x14   :  { %630 = vsyncadd [#allocation6], 4294966784 }
  0x15   :  { %631 = dma.done.wait [#allocation9], 512  }
  0x16   :  { %632 = vsyncadd [#allocation9], 4294966784  ;;  %v456_v0 = vld [vmem:[#allocation7 + $0x8] sm:$0xff]  ;;  %v455_v1 = vld [vmem:[#allocation7] sm:$0xff]  ;;  %vm135_vm0 = vcmask 261120   ;;  %vm273_vm1 = vcmask 64512  }
  0x17   :  { %v454_v2 = vld [vmem:[#allocation5 + $0x8] sm:$0xff]  ;;  %181 = vmatpush.bf16.msra.mxu1 %v456_v0  ;;  %v453_v3 = vld [vmem:[#allocation5] sm:$0xff]  ;;  %v452_v4 = vld [vmem:[#allocation2] sm:$0xff]  ;;  %vm299_vm2 = vcmask 1043456   ;;  %s642_s15 = smov [#allocation11]   ;;  %s393_s19 = sshll.u32 %s750_s9, 4  ;;  %s394_s19 = int_to_ptr.hbm [resolvable:$true] %s393_s19 }
  0x18   :  { %145 = vmatpush.bf16.msra.mxu0 %v454_v2  ;;  %v458_v5 = vld [vmem:[#allocation8 + $0x8] sm:$0xff]  ;;  %v457_v6 = vld [vmem:[#allocation8] sm:$0xff]  ;;  %v471_v7 = vld [vmem:[%s745_s4] ss:$0 sm:$0xff]  ;;  %s391_s16 = sshll.u32 %s642_s15, 4  ;;  %s643_s20 = smov 128   ;;  %s392_s16 = int_to_ptr.vmem [resolvable:$true] %s391_s16 }
  0x19   :  { %217 = vmatpush.bf16.msra.mxu2 %v458_v5  ;;  %v472_v10 = vld [vmem:[%s743_s2] ss:$0 sm:$0xff]  ;;  %v459_v51 = vld [vmem:[#allocation10] sm:$0xff]  ;;  %s644_s21 = smov 8  }
  0x1a   :  { %v473_v30 = vld [vmem:[%s747_s6] ss:$0 sm:$0xff] }
  0x1b   :  { %182 = vmatpush.bf16.msra.mxu1 %v455_v1  ;;  %v460_v50 = vld [vmem:[#allocation10 + $0x8] sm:$0xff] }
  0x1c   :  { %146 = vmatpush.bf16.msra.mxu0 %v453_v3  ;;  %v474_v3 = vld [vmem:[%s749_s8] ss:$0 sm:$0xff] }
  0x1d   :  { %218 = vmatpush.bf16.msra.mxu2 %v457_v6 }
  0x1e   :  { %429 = vmatmul.msk.bf16.vlgmr.msra.gmra.mxu1 %vm135_vm0, %v452_v4 }
  0x1f   :  { %420 = vmatmul.msk.bf16.vlgmr.msra.gmra.mxu0 %vm135_vm0, %v452_v4 }
  0x20   :  { %438 = vmatmul.msk.bf16.vlgmr.msra.gmra.mxu2 %vm135_vm0, %v452_v4 }
  0x9b   :  { %v184_v8 = vpop.f32.mrf.mxu1 }
  0x9c   :  { %v193_v9 = vadd.f32 %v471_v7, %v184_v8  ;;  %v148_v11 = vpop.f32.mrf.mxu0 }
  0x9d   :  { %v157_v14 = vadd.f32 %v472_v10, %v148_v11 }
  0x9e   :  { %v233_v12 = vpack.c.bf16 %v193_v9, %v193_v9 }
  0x9f   :  { %v231_v16 = vpack.c.bf16 %v157_v14, %v157_v14 }
  0xa0   :  { %v239_v13 = vsel %vm135_vm0, %v233_v12, 0 }
  0xa1   :  { %248 = vmatpush.bf16.xpose.msra.mxu3 %v239_v13 }
  0xa3   :  { %v186_v15 = vpop.f32.mrf.mxu1  ;;  %v220_v29 = vpop.f32.mrf.mxu2 }
  0xa4   :  { %v194_v17 = vadd.f32 %v471_v7, %v186_v15  ;;  %v150_v19 = vpop.f32.mrf.mxu0  ;;  %v229_v32 = vadd.f32 %v473_v30, %v220_v29 }
  0xa5   :  { %v158_v21 = vadd.f32 %v472_v10, %v150_v19 }
  0xa6   :  { %v234_v18 = vpack.c.bf16 %v194_v17, %v194_v17  ;;  %v294_v34 = vpack.c.bf16 %v229_v32, %v229_v32 }
  0xa7   :  { %v232_v22 = vpack.c.bf16 %v158_v21, %v158_v21 }
  0xa8   :  { %439 = vmatmul.msk.bf16.vlgmr.msra.gmra.mxu3 %vm135_vm0, %v231_v16  ;;  %v258_v20 = vsel %vm135_vm0, %v234_v18, 0  ;;  %v301_v36 = vsel %vm299_vm2, %v294_v34, 0 }
  0xa9   :  { %267 = vmatpush.bf16.xpose.msrb.mxu0 %v258_v20  ;;  %310 = vmatpush.bf16.msrb.mxu1 %v301_v36 }
  0xaa   :  { %371 = vmatpush.bf16.msrb.mxu3 %v460_v50 }
  0xab   :  { %v222_v31 = vpop.f32.mrf.mxu2 }
  0xac   :  { %v230_v33 = vadd.f32 %v473_v30, %v222_v31 }
  0xae   :  { %v295_v35 = vpack.c.bf16 %v230_v33, %v230_v33  ;;  %372 = vmatpush.bf16.msrb.mxu3 %v459_v51 }
  0xb0   :  { %440 = vmatmul.msk.bf16.vlgmr.msrb.gmra.mxu0 %vm135_vm0, %v232_v22  ;;  %v320_v37 = vsel %vm299_vm2, %v295_v35, 0 }
  0xb1   :  { %329 = vmatpush.bf16.msrb.mxu2 %v320_v37 }
 0x12b   :  { %v250_v23 = vpop.f32.mrf.mxu3 }
 0x12c   :  { %v274_v28 = vsel %vm273_vm1, %v250_v23, -inf }
 0x12d   :  { %v269_v24 = vpop.f32.mrf.mxu0 }
 0x12e   :  { %v277_v25 = vsel %vm273_vm1, %v269_v24, -inf }
 0x12f   :  { %278 = vmax.xlane.f32.xlu0 %v277_v25 }
 0x133   :  { %v252_v26 = vpop.f32.mrf.mxu3 }
 0x135   :  { %v271_v27 = vpop.f32.mrf.mxu0 }
 0x137   :  { %275 = vmax.xlane.f32.xlu0 %v274_v28 }
 0x1a2   :  { %v279_v38 = vpop.xlane.xlu0 %278 }
 0x1a3   :  { %v281_v39 = vsub.f32 %v269_v24, %v279_v38 }
 0x1a5   :  { %v284_v40 = vmul.f32 1.442695, %v281_v39 }
 0x1a7   :  { %475 = vpow2.f32 %v284_v40 }
 0x1aa   :  { %v276_v41 = vpop.xlane.xlu0 %275 }
 0x1ab   :  { %v280_v42 = vsub.f32 %v250_v23, %v276_v41 }
 0x1ad   :  { %v476_v43 = vpop.eup %475  ;;  %v282_v44 = vmul.f32 1.442695, %v280_v42 }
 0x1ae   :  { %v293_v45 = vpack.c.bf16 %v476_v43, %v476_v43  ;;  %v289_v49 = vsel %vm273_vm1, %v476_v43, 0.0 }
 0x1af   :  { %477 = vpow2.f32 %v282_v44 }
 0x1b0   :  { %442 = vmatmul.msk.bf16.vlgmr.msrb.gmra.mxu2 %vm273_vm1, %v293_v45 }
 0x1b5   :  { %v478_v46 = vpop.eup %477 }
 0x1b6   :  { %v286_v47 = vsel %vm273_vm1, %v478_v46, 0.0  ;;  %v292_v48 = vpack.c.bf16 %v478_v46, %v478_v46 }
 0x1b7   :  { %287 = vadd.xlane.f32.xlu1 %v286_v47 }
 0x1b8   :  { %441 = vmatmul.msk.bf16.vlgmr.msrb.gmra.mxu1 %vm273_vm1, %v292_v48 }
 0x1bf   :  { %290 = vadd.xlane.f32.xlu1 %v289_v49 }
 0x22a   :  { %v288_v52 = vpop.xlane.xlu1 %287 }
 0x22b   :  { %479 = vrcp.f32 %v288_v52 }
 0x231   :  { %v480_v55 = vpop.eup %479 }
 0x232   :  { %v291_v53 = vpop.xlane.xlu1 %290 }
 0x233   :  { %481 = vrcp.f32 %v291_v53  ;;  %v331_v54 = vpop.f32.mrf.mxu2 }
 0x235   :  { %v312_v56 = vpop.f32.mrf.mxu1 }
 0x236   :  { %v337_v57 = vmul.f32 %v480_v55, %v312_v56 }
 0x238   :  { %v339_v60 = vpack.c.bf16 %v337_v57, %v337_v57 }
 0x239   :  { %v482_v58 = vpop.eup %481 }
 0x23a   :  { %v338_v59 = vmul.f32 %v482_v58, %v331_v54  ;;  %v347_v1 = vunpack.c.l.b16 %v339_v60 }
 0x23b   :  { %v333_v61 = vpop.f32.mrf.mxu2 }
 0x23c   :  { %v340_v62 = vpack.c.bf16 %v338_v59, %v338_v59 }
 0x23d   :  { %v314_v63 = vpop.f32.mrf.mxu1 }
 0x23e   :  { %v348_v0 = vunpack.c.l.b16 %v340_v62 }
 0x240   :  { %v349_v2 = vpack.c.b16 %v348_v0, %v347_v1 }
 0x242   :  { %451 = vmatmul.msk.bf16.vlgmr.msrb.gmra.mxu3 %vm135_vm0, %v349_v2 }
 0x2c5   :  { %v374_v4 = vpop.f32.mrf.mxu3 }
 0x2c6   :  { %v383_v5 = vadd.f32 %v474_v3, %v374_v4 }
 0x2c8   :  { %385 = vst.msk [vmem:[#allocation11] sm:$0xff] %vm135_vm0, %v383_v5 }
 0x2cd   :  { %v376_v6 = vpop.f32.mrf.mxu3 }
 0x2ce   :  { %v384_v7 = vadd.f32 %v474_v3, %v376_v6 }
 0x2d0   :  { %386 = vst.msk [vmem:[#allocation11 + $0x8] sm:$0xff] %vm135_vm0, %v384_v7 }
 0x2d1   :  { %399 = dma.vmem_to_hbm [thread:$0]  %s392_s16, 256, %s394_s19, [#allocation4], %s643_s20, %s643_s20, %s644_s21  }
 0x2d2   :  { %633 = dma.done.wait [#allocation4], 256  }
 0x2d3   :  { %634 = vsyncadd [#allocation4], 4294967040 }
 0x2d4   :  { %404 = vsyncpa [#allocation3], 1 }
 0x2d5   :  { %405 = vsyncpa [#allocation6], 1 }
 0x2d6   :  { %406 = vsyncpa [#allocation9], 1 }
 0x2d7   :  { %407 = vsyncpa [#allocation4], 1 }

</bundles_post_ra>
